<compile_context>
chip_gen: v6e
topology: v6e:2x2x1
jax: 0.10.0
libtpu: 0.0.40
codegen_flags: <defaults>
</compile_context>

<pallas_src>
import functools

import jax
import jax.numpy as jnp
import numpy as np
from jax.experimental import pallas as pl
from jax.experimental.pallas import tpu as pltpu


def _round_up(v: int, m: int) -> int:
    return ((v + m - 1) // m) * m


def harsanyi_kernel(x_ref, logt_ref, w_ref, mask_ref, out_ref, delta_ref):
    # x_ref:    [TB, I_pad]   activations in the matmul dtype (bf16 by default)
    # logt_ref: [TB, I_pad]   f32 log(max(tanh(gamma*|x|), 1e-30)), precomputed
    # w_ref:    [I_pad, TO]   masked fc weight, pre-transposed, matmul dtype
    # mask_ref: [I_pad, TO]   STE mask as bf16 (exactly 0/1)

    # --- masked linear on the MXU: y[b,o] = sum_i x[b,i] * w[i,o] ------------
    y = jnp.dot(x_ref[...], w_ref[...], preferred_element_type=jnp.float32)

    # --- trigger value via log-space MXU matmul (kept in f32: delta is a ----
    # --- product of near-1 factors and is precision sensitive) ---------------
    mask = mask_ref[...].astype(jnp.float32)          # exact 0/1, cheap VPU cast
    log_delta = jnp.dot(logt_ref[...], mask, preferred_element_type=jnp.float32)
    delta = jnp.exp(log_delta)                        # [TB, TO]  (EUP)

    out_ref[...] = jnp.maximum(y * delta, 0.0).astype(out_ref.dtype)
    delta_ref[...] = delta.astype(delta_ref.dtype)


def prepare_harsanyi_weights(fc_weight, v_weight, *, matmul_dtype=jnp.bfloat16):
    """Batch-independent weight prep. Cache the result across forward calls
    when the weights are reused (avoids re-running the [O,I] mask/transpose)."""
    maskf = (v_weight > 0).astype(jnp.float32)        # STE forward
    w_t = (fc_weight * maskf).T.astype(matmul_dtype)  # [I, O] masked + transposed
    mask_t = maskf.T.astype(jnp.bfloat16)             # [I, O] exact 0/1, half bytes
    return w_t, mask_t


def harsanyi_forward(x, w_t, mask_t, *, gamma=100.0, matmul_dtype=jnp.bfloat16):
    """x: [B, I] f32; w_t/mask_t: [I, O] from prepare_harsanyi_weights."""
    B, I = x.shape
    O = w_t.shape[1]
    mm_bytes = jnp.dtype(matmul_dtype).itemsize

    # --- tile selection -------------------------------------------------------
    I_pad = _round_up(I, 128)
    # TO=256 fills the 256-wide v6e/v7x MXU; fall back to 128 only for tiny O.
    TO = 128 if _round_up(O, 128) == 128 else 256
    O_pad = _round_up(O, TO)
    # One B tile when B <= 512 (no wasted padded tiles); 512-row tiles above.
    B8 = _round_up(B, 8)
    TB = min(B8, 512)
    B_pad = _round_up(B8, TB)

    def vmem_est(tb, to):
        act = tb * I_pad * (mm_bytes + 4)      # x (mm dtype) + logt (f32)
        wgt = I_pad * to * (mm_bytes + 2)      # w (mm dtype) + mask (bf16)
        outs = 2 * tb * to * 4                 # out + delta (f32)
        return 2 * (act + wgt + outs)          # double-buffered pipeline

    VMEM_BUDGET = 48 << 20                     # safe on v5e/v6e and v7x (64 MiB)
    if vmem_est(TB, TO) > VMEM_BUDGET and TO == 256:
        TO = 128
        O_pad = _round_up(O, TO)
    while vmem_est(TB, TO) > VMEM_BUDGET and TB > 64:
        TB = max(64, TB // 2)
        B_pad = _round_up(B8, TB)
    # TODO(synk): if a single (I_pad, TO) weight tile still exceeds the budget
    # (very large input_dim), tile I as an innermost "arbitrary" reduction axis
    # with f32 y / sum-log-delta VMEM scratch accumulators instead of shrinking
    # TB further (K-tiling re-streams weights, so shrink bytes first).

    # --- batch-dependent prep (hoisted out of the kernel) ---------------------
    x_mm = x.astype(matmul_dtype)
    # Guard tanh==0 (x==0): log(0) = -inf would NaN the matmul via -inf * 0.
    # exp(k * log(1e-30)) underflows to 0, matching the exact product.
    logt = jnp.log(jnp.maximum(jnp.tanh(gamma * jnp.abs(x)), 1e-30))  # f32

    # Padded I rows have mask==0 and w==0 -> no effect on y or delta.
    # Padded O columns give y==0, delta==1 and are sliced off below.
    x_p = jnp.pad(x_mm, ((0, B_pad - B), (0, I_pad - I)))
    lt_p = jnp.pad(logt, ((0, B_pad - B), (0, I_pad - I)))
    w_p = jnp.pad(w_t.astype(matmul_dtype), ((0, I_pad - I), (0, O_pad - O)))
    m_p = jnp.pad(mask_t, ((0, I_pad - I), (0, O_pad - O)))

    n_b = B_pad // TB
    n_o = O_pad // TO
    if n_o > 1:
        # B innermost: the (I_pad, TO) weight/mask blocks keep the same block
        # index across consecutive steps -> not re-DMA'd per B tile.  Leading
        # O axis gives megacore sharding with weight residency per core.
        grid = (n_o, n_b)
        act_map = lambda o, b: (b, 0)
        wgt_map = lambda o, b: (0, o)
        out_map = lambda o, b: (b, o)
    else:
        # Single O tile: weights are resident regardless; lead with B so the
        # megacore-sharded leading axis has >= 2 blocks when B is large.
        grid = (n_b, n_o)
        act_map = lambda b, o: (b, 0)
        wgt_map = lambda b, o: (0, o)
        out_map = lambda b, o: (b, o)

    vmem_limit = int(min(VMEM_BUDGET, max(vmem_est(TB, TO) + (4 << 20), 16 << 20)))

    out, delta = pl.pallas_call(
        harsanyi_kernel,
        out_shape=(
            jax.ShapeDtypeStruct((B_pad, O_pad), jnp.float32),
            jax.ShapeDtypeStruct((B_pad, O_pad), jnp.float32),
        ),
        grid=grid,
        in_specs=[
            pl.BlockSpec((TB, I_pad), act_map),    # x      : tile over B
            pl.BlockSpec((TB, I_pad), act_map),    # logt   : tile over B
            pl.BlockSpec((I_pad, TO), wgt_map),    # w.T    : tile over O
            pl.BlockSpec((I_pad, TO), wgt_map),    # mask.T : tile over O
        ],
        out_specs=(
            pl.BlockSpec((TB, TO), out_map),
            pl.BlockSpec((TB, TO), out_map),
        ),
        compiler_params=pltpu.CompilerParams(
            dimension_semantics=("parallel", "parallel"),
            vmem_limit_bytes=vmem_limit),
    )(x_p, lt_p, w_p, m_p)

    return out[:B, :O], delta[:B, :O]


def _reference_forward(x, fc_weight, v_weight, gamma):
    mask = (v_weight > 0).astype(jnp.float32)
    w = fc_weight * mask
    y = x @ w.T
    t = jnp.tanh(gamma * jnp.abs(x))
    delta_en = t[:, None, :] * mask[None, :, :] + (1.0 - mask)[None, :, :]
    delta = jnp.prod(delta_en, axis=-1)
    return jnp.maximum(y * delta, 0.0), delta


def _init_params(input_dim, output_dim, initial_V=1.0, act_ratio=0.1):
    # v.weight: all -initial_V, with act_ratio*input_dim random entries per row
    # set to +initial_V (deterministic via numpy seed).
    rng = np.random.default_rng(0)
    v_w = np.full((output_dim, input_dim), -initial_V, dtype=np.float32)
    n_act = max(1, int(act_ratio * input_dim))
    for o in range(output_dim):
        idx = rng.choice(input_dim, n_act, replace=False)
        v_w[o, idx] = initial_V

    # fc.weight: xavier uniform, bias-free.
    key = jax.random.PRNGKey(0)
    bound = float(np.sqrt(6.0 / (input_dim + output_dim)))
    fc_w = jax.random.uniform(
        key, (output_dim, input_dim), jnp.float32, minval=-bound, maxval=bound
    )
    return fc_w, jnp.asarray(v_w)


if __name__ == "__main__":
    # Small but non-aligned shapes: exercises padding and a multi-tile O grid.
    B, INPUT_DIM, OUTPUT_DIM = 12, 96, 300
    GAMMA = 100.0

    fc_w, v_w = _init_params(INPUT_DIM, OUTPUT_DIM, initial_V=1.0, act_ratio=0.1)
    x = jax.random.normal(jax.random.PRNGKey(0), (B, INPUT_DIM), jnp.float32)

    out_ref, delta_ref = _reference_forward(x, fc_w, v_w, GAMMA)

    # --- f32 y-matmul path: tight numerical check -----------------------------
    w_t32, mask_t32 = prepare_harsanyi_weights(fc_w, v_w, matmul_dtype=jnp.float32)
    fwd_f32 = jax.jit(functools.partial(
        harsanyi_forward, gamma=GAMMA, matmul_dtype=jnp.float32))
    out32, delta32 = fwd_f32(x, w_t32, mask_t32)
    out32 = jax.block_until_ready(out32)
    delta32 = jax.block_until_ready(delta32)
    # exp(sum(log(.))) vs direct product: allow tiny f32 drift.
    np.testing.assert_allclose(np.asarray(delta32), np.asarray(delta_ref),
                               rtol=1e-4, atol=1e-5)
    np.testing.assert_allclose(np.asarray(out32), np.asarray(out_ref),
                               rtol=1e-4, atol=1e-5)

    # --- default bf16 y-matmul path (perf default on v5e/v6e/v7x) -------------
    w_t, mask_t = prepare_harsanyi_weights(fc_w, v_w, matmul_dtype=jnp.bfloat16)
    fwd_bf16 = jax.jit(functools.partial(harsanyi_forward, gamma=GAMMA))
    out_bf, delta_bf = fwd_bf16(x, w_t, mask_t)
    out_bf = jax.block_until_ready(out_bf)
    delta_bf = jax.block_until_ready(delta_bf)
    # delta path stays f32 (logt f32 x exact-0/1 mask) -> tight tolerance;
    # out uses bf16 MXU inputs with f32 accumulation -> looser tolerance.
    np.testing.assert_allclose(np.asarray(delta_bf), np.asarray(delta_ref),
                               rtol=1e-4, atol=1e-5)
    np.testing.assert_allclose(np.asarray(out_bf), np.asarray(out_ref),
                               rtol=2e-2, atol=1e-2)

    print("KERNEL_OK")
</pallas_src>

<mosaic_0001>
module attributes {stable_mosaic.version = 11 : i64} {
  func.func @harsanyi_kernel(%arg0: i32, %arg1: i32, %arg2: memref<16x128xf32, #tpu.memory_space<vmem>>, %arg3: memref<16x128xf32, #tpu.memory_space<vmem>>, %arg4: memref<128x256xf32, #tpu.memory_space<vmem>>, %arg5: memref<128x256xbf16, #tpu.memory_space<vmem>>, %arg6: memref<16x256xf32, #tpu.memory_space<vmem>>, %arg7: memref<16x256xf32, #tpu.memory_space<vmem>>) attributes {dimension_semantics = [#tpu.dimension_semantics<parallel>, #tpu.dimension_semantics<parallel>], iteration_bounds = array<i64: 2, 1>, scalar_prefetch = 0 : i64, scratch_operands = 0 : i64, tpu.core_type = #tpu.core_type<tc>, window_params = [{transform_indices = @transform_0, window_bounds = array<i64: 16, 128>}, {transform_indices = @transform_1, window_bounds = array<i64: 16, 128>}, {transform_indices = @transform_2, window_bounds = array<i64: 128, 256>}, {transform_indices = @transform_3, window_bounds = array<i64: 128, 256>}, {transform_indices = @transform_4, window_bounds = array<i64: 16, 256>}, {transform_indices = @transform_5, window_bounds = array<i64: 16, 256>}]} {
    %c0 = arith.constant 0 : index
    %c0_0 = arith.constant 0 : index
    %0 = vector.load %arg2[%c0, %c0_0] : memref<16x128xf32, #tpu.memory_space<vmem>>, vector<16x128xf32>
    %c0_1 = arith.constant 0 : index
    %c0_2 = arith.constant 0 : index
    %1 = vector.load %arg4[%c0_1, %c0_2] : memref<128x256xf32, #tpu.memory_space<vmem>>, vector<128x256xf32>
    %cst = arith.constant dense<0.000000e+00> : vector<16x256xf32>
    %2 = tpu.matmul %0, %1, %cst {dimension_numbers = #tpu.dot_dimension_numbers<[1], [0], [0], [1], [0, 0, 1, 1], [], []>} : vector<16x128xf32>, vector<128x256xf32>, vector<16x256xf32> -> vector<16x256xf32>
    %c0_3 = arith.constant 0 : index
    %c0_4 = arith.constant 0 : index
    %3 = vector.load %arg5[%c0_3, %c0_4] : memref<128x256xbf16, #tpu.memory_space<vmem>>, vector<128x256xbf16>
    %4 = arith.extf %3 : vector<128x256xbf16> to vector<128x256xf32>
    %c0_5 = arith.constant 0 : index
    %c0_6 = arith.constant 0 : index
    %5 = vector.load %arg3[%c0_5, %c0_6] : memref<16x128xf32, #tpu.memory_space<vmem>>, vector<16x128xf32>
    %cst_7 = arith.constant dense<0.000000e+00> : vector<16x256xf32>
    %6 = tpu.matmul %5, %4, %cst_7 {dimension_numbers = #tpu.dot_dimension_numbers<[1], [0], [0], [1], [0, 0, 1, 1], [], []>} : vector<16x128xf32>, vector<128x256xf32>, vector<16x256xf32> -> vector<16x256xf32>
    %7 = math.exp %6 : vector<16x256xf32>
    %8 = arith.mulf %2, %7 : vector<16x256xf32>
    %cst_8 = arith.constant 0.000000e+00 : f32
    %9 = vector.broadcast %cst_8 : f32 to vector<16x256xf32>
    %10 = arith.maximumf %8, %9 : vector<16x256xf32>
    %c0_9 = arith.constant 0 : index
    %c0_10 = arith.constant 0 : index
    %11 = vector.load %arg6[%c0_9, %c0_10] : memref<16x256xf32, #tpu.memory_space<vmem>>, vector<16x256xf32>
    tpu.vector_store %arg6[%c0_9, %c0_10], %10 {strides = array<i32>} : memref<16x256xf32, #tpu.memory_space<vmem>>, vector<16x256xf32>,
    %c0_11 = arith.constant 0 : index
    %c0_12 = arith.constant 0 : index
    %12 = vector.load %arg7[%c0_11, %c0_12] : memref<16x256xf32, #tpu.memory_space<vmem>>, vector<16x256xf32>
    tpu.vector_store %arg7[%c0_11, %c0_12], %7 {strides = array<i32>} : memref<16x256xf32, #tpu.memory_space<vmem>>, vector<16x256xf32>,
    return
  }
  func.func @transform_0(%arg0: i32, %arg1: i32) -> (i32, i32) {
    %c0_i32 = arith.constant 0 : i32
    %c0_i32_0 = arith.constant 0 : i32
    return %arg1, %c0_i32 : i32, i32
  }
  func.func @transform_1(%arg0: i32, %arg1: i32) -> (i32, i32) {
    %c0_i32 = arith.constant 0 : i32
    %c0_i32_0 = arith.constant 0 : i32
    return %arg1, %c0_i32 : i32, i32
  }
  func.func @transform_2(%arg0: i32, %arg1: i32) -> (i32, i32) {
    %c0_i32 = arith.constant 0 : i32
    %c0_i32_0 = arith.constant 0 : i32
    return %c0_i32, %arg0 : i32, i32
  }
  func.func @transform_3(%arg0: i32, %arg1: i32) -> (i32, i32) {
    %c0_i32 = arith.constant 0 : i32
    %c0_i32_0 = arith.constant 0 : i32
    return %c0_i32, %arg0 : i32, i32
  }
  func.func @transform_4(%arg0: i32, %arg1: i32) -> (i32, i32) {
    %c0_i32 = arith.constant 0 : i32
    return %arg1, %arg0 : i32, i32
  }
  func.func @transform_5(%arg0: i32, %arg1: i32) -> (i32, i32) {
    %c0_i32 = arith.constant 0 : i32
    return %arg1, %arg0 : i32, i32
  }
}

</mosaic_0001>

<bundles_post_ra>
// kernel: harsanyi_forward.1
= control target key start
LH: loop header
LB: loop body
LE: loop exit
PB: predicated region body
PF: predicated region fallthrough
CT: control target
= control target key end

     0   :  { %s1120_s18 = smov 0   ;;  %s1122_s19 = smov 0   ;;  %s1380_s0 = inlined_call_operand.vmem [shape: f32[16,128], index: 0, kind: input, shape index: {}]   ;;  %s1381_s1 = inlined_call_operand.vmem [shape: f32[16,128], index: 1, kind: input, shape index: {}]   ;;  %s1382_s2 = inlined_call_operand.vmem [shape: f32[128,512], index: 2, kind: input, shape index: {}]   ;;  %s1383_s3 = inlined_call_operand.vmem [shape: bf16[128,512], index: 3, kind: input, shape index: {}]   ;;  %s1384_s4 = inlined_call_operand.vmem [shape: f32[16,512], index: 4, kind: output, shape index: {0}]   ;;  %s1385_s5 = inlined_call_operand.vmem [shape: f32[16,512], index: 5, kind: output, shape index: {1}]  }
   0x1   :  { %s1124_s20 = smov 0   ;;  %s1126_s21 = smov 0  }
   0x2   :  { %s1128_s22 = smov 0  }
   0x3 LB: > { %s28_s23 = sadd.s32 1, %s1083_s21  ;;  %s971_s24 = sadd.s32 4294967295, %s1087_s22   ;;  %s1087_s22 = sphi %s1128_s22, %s16_s22   ;;  %s1083_s21 = sphi %s1126_s21, %s1391_s21   ;;  %s1079_s20 = sphi %s1124_s20, %s1390_s20   ;;  %s1075_s19 = sphi %s1122_s19, %s1389_s19   ;;  %s1071_s18 = sphi %s1120_s18, %s1388_s18  }
   0x4   : > { %p30_p0 = scmp.ge.s32.totalorder %s28_s23, 2  ;;  %p94_p1 = scmp.ne.s32.totalorder %s1075_s19, %s1071_s18 }
   0x5   : > { %p95_p2 = scmp.eq.s32.totalorder %s1087_s22, 0  ;;  %p152_p4 = scmp.eq.s32.totalorder %s971_s24, 1 }
   0x6   : > { %s1393_s23 = smov (%p30_p0, %s28_s23), 0  ;;  %s87_s27 = sadd.s32 1, %s1075_s19 }
   0x7   : > { %p1152_p3 = por %p95_p2, %p94_p1  ;;  %s84_s26 = ssub.s32 %s1083_s21, %s1393_s23 }
   0x8   : > { %p85_p5 = scmp.eq.s32.totalorder %s84_s26, 0  ;;  %p1159_p6 = por %p152_p4, %p94_p1 }
   0x9   : > { %p976_p7 = scmp.ge.s32.totalorder %s1087_s22, 2 }
   0xa   : > { %s1164_s29 = scalar_select %p85_p5, %s1075_s19, %s87_s27  }
   0xb   : > { %220 = sbr.rel (%p976_p7) target bundleno = 48 (0x30), region = 24 }
  0x10   : > { %223 = sbr.rel (!%p1152_p3) target bundleno = 36 (0x24), region = 28  ;;  %s225_s30 = sand.u32 (%p1152_p3), 1, %s1075_s19  }
  0x11   : > { %s996_s6 = sshll.u32 (%p1152_p3), %s1083_s21, 4  ;;  %s977_s7 = sshll.u32 (%p1152_p3), %s225_s30, 8 }
  0x12   : > { %s1174_s10 = scalar_lea.vmem (%p1152_p3), %s1382_s2, %s996_s6  ;;  %s1179_s11 = scalar_lea.vmem (%p1152_p3), [#allocation2], %s977_s7 }
  0x13   : > { %v243_v0 = vld [vmem:[%s1174_s10] sm:$0xff] (%p1152_p3)  ;;  %v245_v1 = vld [vmem:[%s1174_s10 + $0x8] sm:$0xff] (%p1152_p3) }
  0x14   : > { %v247_v2 = vld [vmem:[%s1174_s10 + $0x20] sm:$0xff] (%p1152_p3)  ;;  %244 = vst [vmem:[%s1179_s11] sm:$0xff] (%p1152_p3), %v243_v0  ;;  %246 = vst [vmem:[%s1179_s11 + $0x8] sm:$0xff] (%p1152_p3), %v245_v1  ;;  %v249_v3 = vld [vmem:[%s1174_s10 + $0x28] sm:$0xff] (%p1152_p3) }
  0x15   : > { %248 = vst [vmem:[%s1179_s11 + $0x10] sm:$0xff] %v247_v2  ;;  %v251_v4 = vld [vmem:[%s1174_s10 + $0x40] sm:$0xff]  ;;  %v253_v5 = vld [vmem:[%s1174_s10 + $0x48] sm:$0xff]  ;;  %250 = vst [vmem:[%s1179_s11 + $0x18] sm:$0xff] %v249_v3 }
  0x16   : > { %252 = vst [vmem:[%s1179_s11 + $0x20] sm:$0xff] %v251_v4  ;;  %254 = vst [vmem:[%s1179_s11 + $0x28] sm:$0xff] %v253_v5  ;;  %v255_v6 = vld [vmem:[%s1174_s10 + $0x60] sm:$0xff]  ;;  %v257_v7 = vld [vmem:[%s1174_s10 + $0x68] sm:$0xff] }
  0x17   : > { %v259_v8 = vld [vmem:[%s1174_s10 + $0x80] sm:$0xff]  ;;  %256 = vst [vmem:[%s1179_s11 + $0x30] sm:$0xff] %v255_v6  ;;  %258 = vst [vmem:[%s1179_s11 + $0x38] sm:$0xff] %v257_v7  ;;  %v261_v9 = vld [vmem:[%s1174_s10 + $0x88] sm:$0xff] }
  0x18   : > { %260 = vst [vmem:[%s1179_s11 + $0x40] sm:$0xff] %v259_v8  ;;  %v263_v10 = vld [vmem:[%s1174_s10 + $0xa0] sm:$0xff]  ;;  %v265_v11 = vld [vmem:[%s1174_s10 + $0xa8] sm:$0xff]  ;;  %262 = vst [vmem:[%s1179_s11 + $0x48] sm:$0xff] %v261_v9 }
  0x19   : > { %264 = vst [vmem:[%s1179_s11 + $0x50] sm:$0xff] %v263_v10  ;;  %266 = vst [vmem:[%s1179_s11 + $0x58] sm:$0xff] %v265_v11  ;;  %v267_v12 = vld [vmem:[%s1174_s10 + $0xc0] sm:$0xff]  ;;  %v269_v13 = vld [vmem:[%s1174_s10 + $0xc8] sm:$0xff] }
  0x1a   : > { %v271_v14 = vld [vmem:[%s1174_s10 + $0xe0] sm:$0xff]  ;;  %268 = vst [vmem:[%s1179_s11 + $0x60] sm:$0xff] %v267_v12  ;;  %270 = vst [vmem:[%s1179_s11 + $0x68] sm:$0xff] %v269_v13  ;;  %v273_v15 = vld [vmem:[%s1174_s10 + $0xe8] sm:$0xff] }
  0x1b   : > { %272 = vst [vmem:[%s1179_s11 + $0x70] sm:$0xff] %v271_v14  ;;  %v275_v16 = vld [vmem:[%s1174_s10 + $0x100] sm:$0xff]  ;;  %v277_v17 = vld [vmem:[%s1174_s10 + $0x108] sm:$0xff]  ;;  %274 = vst [vmem:[%s1179_s11 + $0x78] sm:$0xff] %v273_v15 }
  0x1c   : > { %276 = vst [vmem:[%s1179_s11 + $0x80] sm:$0xff] %v275_v16  ;;  %278 = vst [vmem:[%s1179_s11 + $0x88] sm:$0xff] %v277_v17  ;;  %v279_v18 = vld [vmem:[%s1174_s10 + $0x120] sm:$0xff]  ;;  %v281_v19 = vld [vmem:[%s1174_s10 + $0x128] sm:$0xff] }
  0x1d   : > { %v283_v20 = vld [vmem:[%s1174_s10 + $0x140] sm:$0xff]  ;;  %280 = vst [vmem:[%s1179_s11 + $0x90] sm:$0xff] %v279_v18  ;;  %282 = vst [vmem:[%s1179_s11 + $0x98] sm:$0xff] %v281_v19  ;;  %v285_v21 = vld [vmem:[%s1174_s10 + $0x148] sm:$0xff] }
  0x1e   : > { %284 = vst [vmem:[%s1179_s11 + $0xa0] sm:$0xff] %v283_v20  ;;  %v287_v22 = vld [vmem:[%s1174_s10 + $0x160] sm:$0xff]  ;;  %v289_v23 = vld [vmem:[%s1174_s10 + $0x168] sm:$0xff]  ;;  %286 = vst [vmem:[%s1179_s11 + $0xa8] sm:$0xff] %v285_v21 }
  0x1f   : > { %288 = vst [vmem:[%s1179_s11 + $0xb0] sm:$0xff] %v287_v22  ;;  %290 = vst [vmem:[%s1179_s11 + $0xb8] sm:$0xff] %v289_v23  ;;  %v291_v24 = vld [vmem:[%s1174_s10 + $0x180] sm:$0xff]  ;;  %v293_v25 = vld [vmem:[%s1174_s10 + $0x188] sm:$0xff] }
  0x20   : > { %v295_v26 = vld [vmem:[%s1174_s10 + $0x1a0] sm:$0xff]  ;;  %292 = vst [vmem:[%s1179_s11 + $0xc0] sm:$0xff] %v291_v24  ;;  %294 = vst [vmem:[%s1179_s11 + $0xc8] sm:$0xff] %v293_v25  ;;  %v297_v27 = vld [vmem:[%s1174_s10 + $0x1a8] sm:$0xff] }
  0x21   : > { %296 = vst [vmem:[%s1179_s11 + $0xd0] sm:$0xff] %v295_v26  ;;  %v299_v28 = vld [vmem:[%s1174_s10 + $0x1c0] sm:$0xff]  ;;  %v301_v29 = vld [vmem:[%s1174_s10 + $0x1c8] sm:$0xff]  ;;  %298 = vst [vmem:[%s1179_s11 + $0xd8] sm:$0xff] %v297_v27 }
  0x22   : > { %300 = vst [vmem:[%s1179_s11 + $0xe0] sm:$0xff] %v299_v28  ;;  %302 = vst [vmem:[%s1179_s11 + $0xe8] sm:$0xff] %v301_v29  ;;  %v303_v30 = vld [vmem:[%s1174_s10 + $0x1e0] sm:$0xff]  ;;  %v305_v31 = vld [vmem:[%s1174_s10 + $0x1e8] sm:$0xff] }
  0x23   : > { %304 = vst [vmem:[%s1179_s11 + $0xf0] sm:$0xff] %v303_v30  ;;  %306 = vst [vmem:[%s1179_s11 + $0xf8] sm:$0xff] %v305_v31 }
  0x24 PF: > { %312 = sbr.rel (!%p1152_p3) target bundleno = 48 (0x30), region = 51  ;;  %s314_s12 = sand.u32 (%p1152_p3), 1, %s1075_s19  }
  0x25   : > { %s997_s13 = sshll.u32 (%p1152_p3), %s1083_s21, 3  ;;  %s980_s14 = sshll.u32 (%p1152_p3), %s314_s12, 7 }
  0x26   : > { %s1249_s17 = scalar_lea.vmem (%p1152_p3), %s1383_s3, %s997_s13  ;;  %s316_s24 = scalar_lea.vmem (%p1152_p3), [#allocation3], %s980_s14 }
  0x27   : > { %v378_v32 = vld [vmem:[%s1249_s17] sm:$0xff] (%p1152_p3)  ;;  %v380_v33 = vld [vmem:[%s1249_s17 + $0x10] sm:$0xff] (%p1152_p3) }
  0x28   : > { %v382_v34 = vld [vmem:[%s1249_s17 + $0x20] sm:$0xff] (%p1152_p3)  ;;  %379 = vst [vmem:[%s316_s24] sm:$0xff] (%p1152_p3), %v378_v32  ;;  %381 = vst [vmem:[%s316_s24 + $0x8] sm:$0xff] (%p1152_p3), %v380_v33  ;;  %v384_v35 = vld [vmem:[%s1249_s17 + $0x30] sm:$0xff] (%p1152_p3) }
  0x29   : > { %383 = vst [vmem:[%s316_s24 + $0x10] sm:$0xff] %v382_v34  ;;  %v386_v36 = vld [vmem:[%s1249_s17 + $0x40] sm:$0xff]  ;;  %v388_v37 = vld [vmem:[%s1249_s17 + $0x50] sm:$0xff]  ;;  %385 = vst [vmem:[%s316_s24 + $0x18] sm:$0xff] %v384_v35 }
  0x2a   : > { %387 = vst [vmem:[%s316_s24 + $0x20] sm:$0xff] %v386_v36  ;;  %389 = vst [vmem:[%s316_s24 + $0x28] sm:$0xff] %v388_v37  ;;  %v390_v38 = vld [vmem:[%s1249_s17 + $0x60] sm:$0xff]  ;;  %v392_v39 = vld [vmem:[%s1249_s17 + $0x70] sm:$0xff] }
  0x2b   : > { %v394_v40 = vld [vmem:[%s1249_s17 + $0x80] sm:$0xff]  ;;  %391 = vst [vmem:[%s316_s24 + $0x30] sm:$0xff] %v390_v38  ;;  %393 = vst [vmem:[%s316_s24 + $0x38] sm:$0xff] %v392_v39  ;;  %v396_v41 = vld [vmem:[%s1249_s17 + $0x90] sm:$0xff] }
  0x2c   : > { %395 = vst [vmem:[%s316_s24 + $0x40] sm:$0xff] %v394_v40  ;;  %v398_v42 = vld [vmem:[%s1249_s17 + $0xa0] sm:$0xff]  ;;  %v400_v43 = vld [vmem:[%s1249_s17 + $0xb0] sm:$0xff]  ;;  %397 = vst [vmem:[%s316_s24 + $0x48] sm:$0xff] %v396_v41 }
  0x2d   : > { %399 = vst [vmem:[%s316_s24 + $0x50] sm:$0xff] %v398_v42  ;;  %401 = vst [vmem:[%s316_s24 + $0x58] sm:$0xff] %v400_v43  ;;  %v402_v44 = vld [vmem:[%s1249_s17 + $0xc0] sm:$0xff]  ;;  %v404_v45 = vld [vmem:[%s1249_s17 + $0xd0] sm:$0xff] }
  0x2e   : > { %v406_v46 = vld [vmem:[%s1249_s17 + $0xe0] sm:$0xff]  ;;  %403 = vst [vmem:[%s316_s24 + $0x60] sm:$0xff] %v402_v44  ;;  %405 = vst [vmem:[%s316_s24 + $0x68] sm:$0xff] %v404_v45  ;;  %v408_v47 = vld [vmem:[%s1249_s17 + $0xf0] sm:$0xff] }
  0x2f   : > { %407 = vst [vmem:[%s316_s24 + $0x70] sm:$0xff] %v406_v46  ;;  %409 = vst [vmem:[%s316_s24 + $0x78] sm:$0xff] %v408_v47 }
  0x30 PF: > { %p983_p8 = scmp.ge.s32.totalorder %s1087_s22, 1  ;;  %p414_p9 = scmp.lt.s32.totalorder %s1087_s22, 3 }
  0x32   : > { %p415_p10 = pnand %p983_p8, %p414_p9 }
  0x33   : > { %s1270_s25 = sand.u32 (!%p415_p10), 1, %s1071_s18  }
  0x34   : > { %418 = sbr.rel (%p415_p10) target bundleno = 325 (0x145), region = 89  ;;  %s984_s26 = sshll.u32 (!%p415_p10), %s1270_s25, 8 }
  0x35   : > { %s985_s27 = sshll.u32 (!%p415_p10), %s1270_s25, 7  ;;  %s1282_s18 = scalar_lea.vmem (!%p415_p10), [#allocation2], %s984_s26 }
  0x36   : > { %s1276_s30 = scalar_lea.vmem (!%p415_p10), [#allocation3], %s985_s27  ;;  %s986_s14 = sshll.u32 (!%p415_p10), %s1270_s25, 5 }
  0x37   : > { %s1343_s15 = scalar_lea.vmem (!%p415_p10), [#allocation5], %s986_s14  ;;  %s465_s16 = scalar_lea.vmem (!%p415_p10), [#allocation4], %s986_s14 }
  0x39   : > { %v1089_v48 = vmov 0.0   ;;  %v616_v49 = vld [vmem:[%s1276_s30 + $0x78] sm:$0xff]  ;;  %v615_v50 = vld [vmem:[%s1276_s30 + $0x70] sm:$0xff]  ;;  %v614_v51 = vld [vmem:[%s1276_s30 + $0x68] sm:$0xff]  ;;  %s998_s17 = sshll.u32 (%p1159_p6), %s1079_s20, 4 }
  0x3a   : > { %715 = vmatprep.mubr.f32.mxu1 %v1089_v48  ;;  %588 = vmatprep.mubr.f32.mxu0 %v1089_v48  ;;  %v648_v52 = vunpack.c.h.bf16 %v616_v49  ;;  %v647_v53 = vunpack.c.l.bf16 %v616_v49  ;;  %v646_v54 = vunpack.c.h.bf16 %v615_v50  ;;  %v645_v55 = vunpack.c.l.bf16 %v615_v50  ;;  %v613_v56 = vld [vmem:[%s1276_s30 + $0x60] sm:$0xff]  ;;  %v523_v57 = vld [vmem:[%s1282_s18 + $0xf8] sm:$0xff]  ;;  %v522_v59 = vld [vmem:[%s1282_s18 + $0xf0] sm:$0xff]  ;;  %s768_s26 = scalar_lea.vmem (%p1159_p6), %s1384_s4, %s998_s17 }
  0x3b   : > { %v644_v58 = vunpack.c.h.bf16 %v614_v51  ;;  %524 = vmatprep.subr.mxu0 %v523_v57  ;;  %v521_v60 = vld [vmem:[%s1282_s18 + $0xe8] sm:$0xff]  ;;  %v643_v61 = vunpack.c.l.bf16 %v614_v51  ;;  %v612_v62 = vld [vmem:[%s1276_s30 + $0x58] sm:$0xff]  ;;  %v520_v63 = vld [vmem:[%s1282_s18 + $0xe0] sm:$0xff]  ;;  %v642_v1 = vunpack.c.h.bf16 %v613_v56  ;;  %v641_v3 = vunpack.c.l.bf16 %v613_v56 }
  0x3c   : > { %651 = vmatprep.subr.mxu1 %v648_v52  ;;  %525 = vmatpush1.msra.mxu0 %v522_v59  ;;  %v519_v0 = vld [vmem:[%s1282_s18 + $0xd8] sm:$0xff]  ;;  %v518_v2 = vld [vmem:[%s1282_s18 + $0xd0] sm:$0xff]  ;;  %v517_v5 = vld [vmem:[%s1282_s18 + $0xc8] sm:$0xff]  ;;  %v640_v6 = vunpack.c.h.bf16 %v612_v62  ;;  %v639_v8 = vunpack.c.l.bf16 %v612_v62 }
  0x3d   : > { %652 = vmatpush1.msra.mxu1 %v647_v53  ;;  %526 = vmatprep.subr.mxu0 %v521_v60  ;;  %v611_v4 = vld [vmem:[%s1276_s30 + $0x50] sm:$0xff]  ;;  %v516_v7 = vld [vmem:[%s1282_s18 + $0xc0] sm:$0xff]  ;;  %v610_v9 = vld [vmem:[%s1276_s30 + $0x48] sm:$0xff] }
  0x3e   : > { %653 = vmatprep.subr.mxu1 %v646_v54  ;;  %527 = vmatpush1.msra.mxu0 %v520_v63  ;;  %v515_v10 = vld [vmem:[%s1282_s18 + $0xb8] sm:$0xff]  ;;  %v638_v11 = vunpack.c.h.bf16 %v611_v4  ;;  %v514_v12 = vld [vmem:[%s1282_s18 + $0xb0] sm:$0xff]  ;;  %v637_v13 = vunpack.c.l.bf16 %v611_v4  ;;  %v609_v14 = vld [vmem:[%s1276_s30 + $0x40] sm:$0xff]  ;;  %v636_v16 = vunpack.c.h.bf16 %v610_v9  ;;  %v635_v18 = vunpack.c.l.bf16 %v610_v9 }
  0x3f   : > { %654 = vmatpush1.msra.mxu1 %v645_v55  ;;  %528 = vmatprep.subr.mxu0 %v519_v0  ;;  %v513_v15 = vld [vmem:[%s1282_s18 + $0xa8] sm:$0xff]  ;;  %v512_v17 = vld [vmem:[%s1282_s18 + $0xa0] sm:$0xff]  ;;  %v608_v19 = vld [vmem:[%s1276_s30 + $0x38] sm:$0xff]  ;;  %v634_v21 = vunpack.c.h.bf16 %v609_v14  ;;  %v633_v23 = vunpack.c.l.bf16 %v609_v14 }
  0x40   : > { %655 = vmatprep.subr.mxu1 %v644_v58  ;;  %529 = vmatpush1.msra.mxu0 %v518_v2  ;;  %v511_v20 = vld [vmem:[%s1282_s18 + $0x98] sm:$0xff]  ;;  %v510_v22 = vld [vmem:[%s1282_s18 + $0x90] sm:$0xff]  ;;  %v509_v25 = vld [vmem:[%s1282_s18 + $0x88] sm:$0xff]  ;;  %v632_v26 = vunpack.c.h.bf16 %v608_v19  ;;  %v631_v28 = vunpack.c.l.bf16 %v608_v19 }
  0x41   : > { %656 = vmatpush1.msra.mxu1 %v643_v61  ;;  %530 = vmatprep.subr.mxu0 %v517_v5  ;;  %v607_v24 = vld [vmem:[%s1276_s30 + $0x30] sm:$0xff]  ;;  %v508_v27 = vld [vmem:[%s1282_s18 + $0x80] sm:$0xff]  ;;  %v606_v29 = vld [vmem:[%s1276_s30 + $0x28] sm:$0xff] }
  0x42   : > { %657 = vmatprep.subr.mxu1 %v642_v1  ;;  %531 = vmatpush1.msra.mxu0 %v516_v7  ;;  %v507_v30 = vld [vmem:[%s1282_s18 + $0x78] sm:$0xff]  ;;  %v630_v31 = vunpack.c.h.bf16 %v607_v24  ;;  %v506_v32 = vld [vmem:[%s1282_s18 + $0x70] sm:$0xff]  ;;  %v629_v33 = vunpack.c.l.bf16 %v607_v24  ;;  %v605_v34 = vld [vmem:[%s1276_s30 + $0x20] sm:$0xff]  ;;  %v628_v36 = vunpack.c.h.bf16 %v606_v29  ;;  %v627_v38 = vunpack.c.l.bf16 %v606_v29 }
  0x43   : > { %658 = vmatpush1.msra.mxu1 %v641_v3  ;;  %532 = vmatprep.subr.mxu0 %v515_v10  ;;  %v505_v35 = vld [vmem:[%s1282_s18 + $0x68] sm:$0xff]  ;;  %v504_v37 = vld [vmem:[%s1282_s18 + $0x60] sm:$0xff]  ;;  %v604_v39 = vld [vmem:[%s1276_s30 + $0x18] sm:$0xff]  ;;  %v626_v41 = vunpack.c.h.bf16 %v605_v34  ;;  %v625_v43 = vunpack.c.l.bf16 %v605_v34 }
  0x44   : > { %659 = vmatprep.subr.mxu1 %v640_v6  ;;  %533 = vmatpush1.msra.mxu0 %v514_v12  ;;  %v503_v40 = vld [vmem:[%s1282_s18 + $0x58] sm:$0xff]  ;;  %v502_v42 = vld [vmem:[%s1282_s18 + $0x50] sm:$0xff]  ;;  %v501_v45 = vld [vmem:[%s1282_s18 + $0x48] sm:$0xff]  ;;  %v624_v46 = vunpack.c.h.bf16 %v604_v39  ;;  %v623_v49 = vunpack.c.l.bf16 %v604_v39 }
  0x45   : > { %660 = vmatpush1.msra.mxu1 %v639_v8  ;;  %534 = vmatprep.subr.mxu0 %v513_v15  ;;  %v603_v44 = vld [vmem:[%s1276_s30 + $0x10] sm:$0xff]  ;;  %v500_v47 = vld [vmem:[%s1282_s18 + $0x40] sm:$0xff]  ;;  %v602_v50 = vld [vmem:[%s1276_s30 + $0x8] sm:$0xff] }
  0x46   : > { %661 = vmatprep.subr.mxu1 %v638_v11  ;;  %535 = vmatpush1.msra.mxu0 %v512_v17  ;;  %v499_v51 = vld [vmem:[%s1282_s18 + $0x38] sm:$0xff]  ;;  %v622_v52 = vunpack.c.h.bf16 %v603_v44  ;;  %v498_v53 = vld [vmem:[%s1282_s18 + $0x30] sm:$0xff]  ;;  %v621_v54 = vunpack.c.l.bf16 %v603_v44  ;;  %v601_v55 = vld [vmem:[%s1276_s30] sm:$0xff]  ;;  %v620_v57 = vunpack.c.h.bf16 %v602_v50  ;;  %v619_v59 = vunpack.c.l.bf16 %v602_v50 }
  0x47   : > { %662 = vmatpush1.msra.mxu1 %v637_v13  ;;  %536 = vmatprep.subr.mxu0 %v511_v20  ;;  %v497_v56 = vld [vmem:[%s1282_s18 + $0x28] sm:$0xff]  ;;  %v496_v58 = vld [vmem:[%s1282_s18 + $0x20] sm:$0xff]  ;;  %v495_v60 = vld [vmem:[%s1282_s18 + $0x18] sm:$0xff]  ;;  %v618_v61 = vunpack.c.h.bf16 %v601_v55  ;;  %v617_v63 = vunpack.c.l.bf16 %v601_v55 }
  0x48   : > { %663 = vmatprep.subr.mxu1 %v636_v16  ;;  %537 = vmatpush1.msra.mxu0 %v510_v22  ;;  %v494_v62 = vld [vmem:[%s1282_s18 + $0x10] sm:$0xff]  ;;  %v493_v0 = vld [vmem:[%s1282_s18 + $0x8] sm:$0xff]  ;;  %v492_v1 = vld [vmem:[%s1282_s18] sm:$0xff] }
  0x49   : > { %664 = vmatpush1.msra.mxu1 %v635_v18  ;;  %538 = vmatprep.subr.mxu0 %v509_v25  ;;  %v649_v2 = vld [vmem:[%s1381_s1] sm:$0xff]  ;;  %v650_v4 = vld [vmem:[%s1381_s1 + $0x8] sm:$0xff] }
  0x4a   : > { %665 = vmatprep.subr.mxu1 %v634_v21  ;;  %539 = vmatpush1.msra.mxu0 %v508_v27  ;;  %v490_v3 = vld [vmem:[%s1380_s0] sm:$0xff]  ;;  %v491_v5 = vld [vmem:[%s1380_s0 + $0x8] sm:$0xff] }
  0x4b   : > { %666 = vmatpush1.msra.mxu1 %v633_v23  ;;  %540 = vmatprep.subr.mxu0 %v507_v30 }
  0x4c   : > { %667 = vmatprep.subr.mxu1 %v632_v26  ;;  %541 = vmatpush1.msra.mxu0 %v506_v32 }
  0x4d   : > { %668 = vmatpush1.msra.mxu1 %v631_v28  ;;  %542 = vmatprep.subr.mxu0 %v505_v35 }
  0x4e   : > { %669 = vmatprep.subr.mxu1 %v630_v31  ;;  %543 = vmatpush1.msra.mxu0 %v504_v37 }
  0x4f   : > { %670 = vmatpush1.msra.mxu1 %v629_v33  ;;  %544 = vmatprep.subr.mxu0 %v503_v40 }
  0x50   : > { %671 = vmatprep.subr.mxu1 %v628_v36  ;;  %545 = vmatpush1.msra.mxu0 %v502_v42 }
  0x51   : > { %672 = vmatpush1.msra.mxu1 %v627_v38  ;;  %546 = vmatprep.subr.mxu0 %v501_v45 }
  0x52   : > { %673 = vmatprep.subr.mxu1 %v626_v41  ;;  %547 = vmatpush1.msra.mxu0 %v500_v47 }
  0x53   : > { %674 = vmatpush1.msra.mxu1 %v625_v43  ;;  %548 = vmatprep.subr.mxu0 %v499_v51 }
  0x54   : > { %675 = vmatprep.subr.mxu1 %v624_v46  ;;  %549 = vmatpush1.msra.mxu0 %v498_v53 }
  0x55   : > { %676 = vmatpush1.msra.mxu1 %v623_v49  ;;  %550 = vmatprep.subr.mxu0 %v497_v56 }
  0x56   : > { %677 = vmatprep.subr.mxu1 %v622_v52  ;;  %551 = vmatpush1.msra.mxu0 %v496_v58 }
  0x57   : > { %678 = vmatpush1.msra.mxu1 %v621_v54  ;;  %552 = vmatprep.subr.mxu0 %v495_v60 }
  0x58   : > { %679 = vmatprep.subr.mxu1 %v620_v57  ;;  %553 = vmatpush1.msra.mxu0 %v494_v62 }
  0x59   : > { %680 = vmatpush1.msra.mxu1 %v619_v59  ;;  %554 = vmatprep.subr.mxu0 %v493_v0 }
  0x5a   : > { %681 = vmatprep.subr.mxu1 %v618_v61  ;;  %555 = vmatpush1.msra.mxu0 %v492_v1 }
  0x5b   : > { %682 = vmatpush1.msra.mxu1 %v617_v63  ;;  %589 = vmatmul.mubr.f32.vlgmr.msra.gmra.mxu0 %v490_v3 }
  0x5c   : > { %716 = vmatmul.mubr.f32.vlgmr.msra.gmra.mxu1 %v649_v2  ;;  %594 = vmatprep.mubr.f32.mxu0 %v1089_v48 }
  0x5d   : > { %721 = vmatprep.mubr.f32.mxu1 %v1089_v48 }
  0x5f   : > { %595 = vmatmul.mubr.f32.gmra.mxu0 %v491_v5 }
  0x60   : > { %722 = vmatmul.mubr.f32.gmra.mxu1 %v650_v4 }
 0x11b   : > { %v590_v48 = vpop.f32.mrf.mxu0 }
 0x11c   : > { %v717_v6 = vpop.f32.mrf.mxu1 }
 0x11d   : > { %v728_v7 = vmul.f32 1.442695, %v717_v6  ;;  %v592_v14 = vpop.f32.mrf.mxu0 }
 0x11e   : > { %v719_v8 = vpop.f32.mrf.mxu1 }
 0x11f   : > { %1041 = vpow2.f32 %v728_v7  ;;  %v730_v9 = vmul.f32 1.442695, %v719_v8  ;;  %v596_v18 = vpop.f32.mrf.mxu0 }
 0x120   : > { %v723_v10 = vpop.f32.mrf.mxu1 }
 0x121   : > { %1043 = vpow2.f32 %v730_v9  ;;  %v732_v11 = vmul.f32 1.442695, %v723_v10  ;;  %v598_v25 = vpop.f32.mrf.mxu0 }
 0x122   : > { %v725_v12 = vpop.f32.mrf.mxu1 }
 0x123   : > { %1045 = vpow2.f32 %v732_v11  ;;  %v734_v13 = vmul.f32 1.442695, %v725_v12 }
 0x125   : > { %1047 = vpow2.f32 %v734_v13 }
 0x12c   : > { %v1042_v15 = vpop.eup %1041 }
 0x12d   : > { %v736_v16 = vmul.f32 %v1042_v15, %v590_v48  ;;  %748 = vst [vmem:[%s1343_s15] sm:$0xff] %v1042_v15 }
 0x12e   : > { %v1044_v17 = vpop.eup %1043 }
 0x12f   : > { %v740_v19 = vmax.f32 %v736_v16, 0.0  ;;  %749 = vst [vmem:[%s1343_s15 + $0x8] sm:$0xff] %v1044_v17  ;;  %v737_v20 = vmul.f32 %v1044_v17, %v592_v14 }
 0x130   : > { %v1046_v21 = vpop.eup %1045 }
 0x131   : > { %744 = vst [vmem:[%s465_s16] sm:$0xff] %v740_v19  ;;  %750 = vst [vmem:[%s1343_s15 + $0x10] sm:$0xff] %v1046_v21  ;;  %v741_v22 = vmax.f32 %v737_v20, 0.0  ;;  %v738_v23 = vmul.f32 %v1046_v21, %v596_v18 }
 0x132   : > { %v1048_v24 = vpop.eup %1047 }
 0x133   : > { %751 = vst [vmem:[%s1343_s15 + $0x18] sm:$0xff] %v1048_v24  ;;  %745 = vst [vmem:[%s465_s16 + $0x8] sm:$0xff] %v741_v22  ;;  %v742_v26 = vmax.f32 %v738_v23, 0.0  ;;  %v739_v27 = vmul.f32 %v1048_v24, %v598_v25  ;;  %762 = sbr.rel (!%p1159_p6) target bundleno = 320 (0x140), region = 101 }
 0x135   : > { %746 = vst [vmem:[%s465_s16 + $0x10] sm:$0xff] %v742_v26  ;;  %v743_v28 = vmax.f32 %v739_v27, 0.0 }
 0x137   : > { %747 = vst [vmem:[%s465_s16 + $0x18] sm:$0xff] %v743_v28 }
 0x138   : > { %v781_v29 = vld [vmem:[%s465_s16] sm:$0xff] }
 0x139   : > { %782 = vst [vmem:[%s768_s26] sm:$0xff] %v781_v29 }
 0x13a   : > { %v783_v30 = vld [vmem:[%s465_s16 + $0x8] sm:$0xff] }
 0x13b   : > { %784 = vst [vmem:[%s768_s26 + $0x8] sm:$0xff] %v783_v30 }
 0x13c   : > { %v785_v31 = vld [vmem:[%s465_s16 + $0x10] sm:$0xff] }
 0x13d   : > { %786 = vst [vmem:[%s768_s26 + $0x20] sm:$0xff] %v785_v31 }
 0x13e   : > { %v787_v32 = vld [vmem:[%s465_s16 + $0x18] sm:$0xff] }
 0x13f   : > { %788 = vst [vmem:[%s768_s26 + $0x28] sm:$0xff] %v787_v32 }
 0x140 PF: > { %794 = sbr.rel (!%p1159_p6) target bundleno = 325 (0x145), region = 124  ;;  %s999_s27 = sshll.u32 (%p1159_p6), %s1079_s20, 4  ;;  %v813_v33 = vld [vmem:[%s1343_s15] sm:$0xff] (%p1159_p6)  ;;  %v815_v34 = vld [vmem:[%s1343_s15 + $0x8] sm:$0xff] (%p1159_p6)  ;;  %v817_v35 = vld [vmem:[%s1343_s15 + $0x10] sm:$0xff] (%p1159_p6) }
 0x141   : > { %s800_s6 = scalar_lea.vmem (%p1159_p6), %s1385_s5, %s999_s27 }
 0x142   : > { %v819_v36 = vld [vmem:[%s1343_s15 + $0x18] sm:$0xff] (%p1159_p6)  ;;  %814 = vst [vmem:[%s800_s6] sm:$0xff] (%p1159_p6), %v813_v33  ;;  %816 = vst [vmem:[%s800_s6 + $0x8] sm:$0xff] (%p1159_p6), %v815_v34 }
 0x143   : > { %818 = vst [vmem:[%s800_s6 + $0x20] sm:$0xff] (%p1159_p6), %v817_v35  ;;  %820 = vst [vmem:[%s800_s6 + $0x28] sm:$0xff] (%p1159_p6), %v819_v36 }
 0x145 PF: > { %s16_s22 = sadd.s32 1, %s1087_s22   ;;  %s1388_s18 = smov %s1075_s19 }
 0x146   : > { %p13_p11 = scmp.ge.s32.totalorder %s16_s22, 4   ;;  %s1389_s19 = smov %s1164_s29 }
 0x147   : > { %s1390_s20 = smov %s1083_s21  ;;  %s1391_s21 = smov %s1393_s23 }
 0x148   :  { %15 = sbr.rel (!%p13_p11) target bundleno = 3 (0x3), region = 204 }

</bundles_post_ra>
